<compile_context>
chip_gen: v6e
topology: v6e:2x2x1
jax: 0.10.0
libtpu: 0.0.40
codegen_flags: <defaults>
</compile_context>

<pallas_src>
import functools

import jax
import jax.numpy as jnp
from jax.experimental import pallas as pl
from jax.experimental.pallas import tpu as pltpu


def _round_up(x, m):
    return (x + m - 1) // m * m


def to_2tuple(v):
    return v if isinstance(v, tuple) else (v, v)


def _choose_m_tile(m_total, max_tile=512):
    """Pick an M tile (multiple of 8, <= max_tile) and the padded M extent."""
    m8 = _round_up(m_total, 8)
    if m8 <= max_tile:
        return m8, m8
    # Prefer the largest multiple-of-8 divisor of m8 (no padded rows at all).
    for d in range(max_tile, 0, -8):
        if m8 % d == 0 and d >= 128:
            return d, m8
    # Fall back to a fixed tile and pad M up to a multiple of it.
    return max_tile, _round_up(m_total, max_tile)


def _patch_embed_kernel(x_ref, w_ref, b_ref, o_ref):
    """One M tile of patch rows.

    x_ref: (tm, K)      bf16 im2col rows (K = C*ph*pw, lane-dense minor axis)
    w_ref: (K, Npad)    bf16 projection weight (resident across the grid)
    b_ref: (1, Npad)    f32 bias (lane-padded)
    o_ref: (tm, Npad)   output rows (lane-dense, sublane-dense)
    """
    acc = jnp.dot(x_ref[...], w_ref[...], preferred_element_type=jnp.float32)
    o_ref[...] = (acc + b_ref[...]).astype(o_ref.dtype)


@functools.partial(jax.jit, static_argnames=("patch_size", "embed_dim"))
def patch_embed_forward(x, w_mat, bias_row, *, patch_size, embed_dim):
    B, C, H, W = x.shape
    ph = pw = patch_size
    gh, gw = H // ph, W // pw
    K = C * ph * pw
    n_pad = bias_row.shape[1]
    m_total = B * gh * gw

    # im2col done once in XLA (transpose fused with the bf16 cast): one row per
    # patch, the K = C*ph*pw contraction on the minor, lane-dense axis.
    x6 = x.astype(jnp.bfloat16).reshape(B, C, gh, ph, gw, pw)
    cols = jnp.transpose(x6, (0, 2, 4, 1, 3, 5)).reshape(m_total, K)

    tm, m_pad = _choose_m_tile(m_total)
    if m_pad != m_total:
        cols = jnp.pad(cols, ((0, m_pad - m_total), (0, 0)))

    out = pl.pallas_call(
        _patch_embed_kernel,
        out_shape=jax.ShapeDtypeStruct((m_pad, n_pad), x.dtype),
        grid_spec=pltpu.PrefetchScalarGridSpec(
            num_scalar_prefetch=0,
            grid=(m_pad // tm,),
            in_specs=[
                pl.BlockSpec((tm, K), lambda i: (i, 0)),      # patch rows
                pl.BlockSpec((K, n_pad), lambda i: (0, 0)),   # resident weight
                pl.BlockSpec((1, n_pad), lambda i: (0, 0)),   # resident bias
            ],
            out_specs=pl.BlockSpec((tm, n_pad), lambda i: (i, 0)),
        ),
        compiler_params=pltpu.CompilerParams(
            dimension_semantics=("parallel",),
            vmem_limit_bytes=32 * 1024 * 1024,
        ),
    )(cols, w_mat, bias_row)

    out = out[:m_total].reshape(B, gh * gw, n_pad)
    if n_pad != embed_dim:
        # Only happens for non-128-multiple embed dims (not ViT-base's 768).
        out = out[..., :embed_dim]
    return out


class DeitPatchEmbed:
    """JAX/Pallas re-implementation of deit_PatchEmbed.

    Mirrors nn.Conv2d(in_chans, embed_dim, kernel_size=patch_size,
    stride=patch_size) followed by flatten(2).transpose(1, 2).
    """

    def __init__(self, img_size=224, patch_size=16, in_chans=3, embed_dim=768,
                 key=None):
        img_size = to_2tuple(img_size)
        patch_size = to_2tuple(patch_size)
        assert patch_size[0] == patch_size[1], "square patches assumed"
        self.img_size = img_size
        self.patch_size = patch_size
        self.num_patches = (img_size[1] // patch_size[1]) * (img_size[0] // patch_size[0])
        self.in_chans = in_chans
        self.embed_dim = embed_dim

        ph, pw = patch_size
        if key is None:
            key = jax.random.PRNGKey(42)
        kw, kb = jax.random.split(key)
        fan_in = in_chans * ph * pw
        bound = 1.0 / (fan_in ** 0.5)
        # Conv2d-style parameters (deterministic init), kept in f32 as the
        # "source of truth" (also used by the pure-JAX reference).
        self.weight = jax.random.uniform(
            kw, (embed_dim, in_chans, ph, pw),
            minval=-bound, maxval=bound, dtype=jnp.float32)
        self.bias = jax.random.uniform(
            kb, (embed_dim,), minval=-bound, maxval=bound, dtype=jnp.float32)

        # --- one-time host-side weight re-arrangement (not per-forward) ------
        # w_mat[k, e] == weight[e, c, p, q] with k = (c*ph + p)*pw + q, which
        # matches the im2col row layout produced in patch_embed_forward.
        n_pad = _round_up(embed_dim, 128)        # lane-dense output stores
        w_mat = jnp.transpose(self.weight, (1, 2, 3, 0)).reshape(
            in_chans * ph * pw, embed_dim)
        if n_pad != embed_dim:
            w_mat = jnp.pad(w_mat, ((0, 0), (0, n_pad - embed_dim)))
            bias_row = jnp.pad(self.bias, (0, n_pad - embed_dim)).reshape(1, n_pad)
        else:
            bias_row = self.bias.reshape(1, n_pad)
        self.w_mat = w_mat.astype(jnp.bfloat16)       # MXU-native operands
        self.bias_row = bias_row.astype(jnp.float32)  # bias added in f32
        self._n_pad = n_pad

    def __call__(self, x):
        B, C, H, W = x.shape
        assert (H, W) == self.img_size and C == self.in_chans
        assert H % self.patch_size[0] == 0 and W % self.patch_size[1] == 0
        return patch_embed_forward(
            x, self.w_mat, self.bias_row,
            patch_size=self.patch_size[0], embed_dim=self.embed_dim)


def _reference(x, weight, bias, patch_size):
    # Pure-JAX reference: Conv2d(stride=kernel=patch) + flatten(2) + transpose.
    out = jax.lax.conv_general_dilated(
        x, weight,
        window_strides=(patch_size, patch_size),
        padding="VALID",
        dimension_numbers=("NCHW", "OIHW", "NCHW"),
    ) + bias[None, :, None, None]
    B, E, gh, gw = out.shape
    return jnp.transpose(out.reshape(B, E, gh * gw), (0, 2, 1))


if __name__ == "__main__":
    key = jax.random.PRNGKey(0)
    kx, kp = jax.random.split(key)

    B, C, H, W = 2, 4, 16, 16
    patch_size, embed_dim = 4, 32

    x = jax.random.normal(kx, (B, C, H, W), dtype=jnp.float32)

    module = DeitPatchEmbed(img_size=H, patch_size=patch_size,
                            in_chans=C, embed_dim=embed_dim, key=kp)

    out = jax.block_until_ready(module(x))
    assert out.shape == (B, module.num_patches, embed_dim), out.shape

    ref = jax.block_until_ready(
        _reference(x, module.weight, module.bias, patch_size))
    # bf16 matmul operands with f32 accumulation -> loosened tolerance.
    assert jnp.allclose(out, ref, atol=5e-2, rtol=5e-2), "mismatch vs reference"

    print("KERNEL_OK")
</pallas_src>

<mosaic_0001>
module attributes {stable_mosaic.version = 11 : i64} {
  func.func @_patch_embed_kernel(%arg0: i32, %arg1: memref<32x64xbf16, #tpu.memory_space<vmem>>, %arg2: memref<64x128xbf16, #tpu.memory_space<vmem>>, %arg3: memref<1x128xf32, #tpu.memory_space<vmem>>, %arg4: memref<32x128xf32, #tpu.memory_space<vmem>>) attributes {dimension_semantics = [#tpu.dimension_semantics<parallel>], iteration_bounds = array<i64: 1>, scalar_prefetch = 0 : i64, scratch_operands = 0 : i64, tpu.core_type = #tpu.core_type<tc>, window_params = [{transform_indices = @transform_0, window_bounds = array<i64: 32, 64>}, {pipeline_mode = #tpu.pipeline_mode<synchronous>, transform_indices = @transform_1, window_bounds = array<i64: 64, 128>}, {pipeline_mode = #tpu.pipeline_mode<synchronous>, transform_indices = @transform_2, window_bounds = array<i64: 1, 128>}, {transform_indices = @transform_3, window_bounds = array<i64: 32, 128>}]} {
    %c0 = arith.constant 0 : index
    %c0_0 = arith.constant 0 : index
    %0 = vector.load %arg1[%c0, %c0_0] : memref<32x64xbf16, #tpu.memory_space<vmem>>, vector<32x64xbf16>
    %c0_1 = arith.constant 0 : index
    %c0_2 = arith.constant 0 : index
    %1 = vector.load %arg2[%c0_1, %c0_2] : memref<64x128xbf16, #tpu.memory_space<vmem>>, vector<64x128xbf16>
    %cst = arith.constant dense<0.000000e+00> : vector<32x128xf32>
    %2 = tpu.matmul %0, %1, %cst {dimension_numbers = #tpu.dot_dimension_numbers<[1], [0], [0], [1], [0, 0, 1, 1], [], []>} : vector<32x64xbf16>, vector<64x128xbf16>, vector<32x128xf32> -> vector<32x128xf32>
    %c0_3 = arith.constant 0 : index
    %c0_4 = arith.constant 0 : index
    %3 = vector.load %arg3[%c0_3, %c0_4] : memref<1x128xf32, #tpu.memory_space<vmem>>, vector<1x128xf32>
    %4 = vector.broadcast %3 : vector<1x128xf32> to vector<32x128xf32>
    %5 = arith.addf %2, %4 : vector<32x128xf32>
    %c0_5 = arith.constant 0 : index
    %c0_6 = arith.constant 0 : index
    %6 = vector.load %arg4[%c0_5, %c0_6] : memref<32x128xf32, #tpu.memory_space<vmem>>, vector<32x128xf32>
    tpu.vector_store %arg4[%c0_5, %c0_6], %5 {strides = array<i32>} : memref<32x128xf32, #tpu.memory_space<vmem>>, vector<32x128xf32>,
    return
  }
  func.func @transform_0(%arg0: i32) -> (i32, i32) {
    %c0_i32 = arith.constant 0 : i32
    %c0_i32_0 = arith.constant 0 : i32
    return %arg0, %c0_i32 : i32, i32
  }
  func.func @transform_1(%arg0: i32) -> (i32, i32) {
    %c0_i32 = arith.constant 0 : i32
    %c0_i32_0 = arith.constant 0 : i32
    %c0_i32_1 = arith.constant 0 : i32
    return %c0_i32, %c0_i32_0 : i32, i32
  }
  func.func @transform_2(%arg0: i32) -> (i32, i32) {
    %c0_i32 = arith.constant 0 : i32
    %c0_i32_0 = arith.constant 0 : i32
    %c0_i32_1 = arith.constant 0 : i32
    return %c0_i32, %c0_i32_0 : i32, i32
  }
  func.func @transform_3(%arg0: i32) -> (i32, i32) {
    %c0_i32 = arith.constant 0 : i32
    %c0_i32_0 = arith.constant 0 : i32
    return %arg0, %c0_i32 : i32, i32
  }
}

</mosaic_0001>

<bundles_post_ra>
// kernel: patch_embed_forward.1
= control target key start
LH: loop header
LB: loop body
LE: loop exit
PB: predicated region body
PF: predicated region fallthrough
CT: control target
= control target key end

     0   :  { %vm69_vm0 = vcmask 523264   ;;  %s250_s0 = inlined_call_operand.vmem [shape: bf16[32,64], index: 0, kind: input, shape index: {}]   ;;  %s251_s1 = inlined_call_operand.vmem [shape: bf16[64,128], index: 1, kind: input, shape index: {}]   ;;  %s252_s2 = inlined_call_operand.vmem [shape: f32[1,128], index: 2, kind: input, shape index: {}]   ;;  %s253_s3 = inlined_call_operand.hbm [shape: f32[32,128], index: 3, kind: output, shape index: {}]  }
   0x1   :  { %v175_v0 = vld [vmem:[%s251_s1 + $0x18] sm:$0xff]   ;;  %v176_v1 = vld [vmem:[%s251_s1 + $0x10] sm:$0xff]   ;;  %v177_v2 = vld [vmem:[%s251_s1 + $0x8] sm:$0xff]  }
   0x2   :  { %160 = vmatprep.subr.bf16.mxu0 %v175_v0  ;;  %v179_v3 = vld [vmem:[%s250_s0] sm:$0xff]  }
   0x3   :  { %161 = vmatpush3.bf16.msra.mxu0 %v175_v0  ;;  %168 = vmatprep.mubr.msk.bf16.mxu0 %vm69_vm0, %v179_v3 }
   0x4   :  { %162 = vmatprep.subr.bf16.mxu0 %v176_v1 }
   0x5   :  { %8 = vsyncpa [#allocation3], 0  ;;  %v178_v4 = vld [vmem:[%s251_s1] sm:$0xff]   ;;  %v180_v5 = vld [vmem:[%s250_s0 + $0x8] sm:$0xff]   ;;  %s203_s26 = smov [#allocation2]  }
   0x6   :  { %v145_v6 = vld [vmem:[%s252_s2] ss:$0 sm:$0xff]  ;;  %s134_s27 = sshll.u32 %s203_s26, 4  ;;  %s135_s27 = int_to_ptr.vmem [resolvable:$true] %s134_s27 }
   0x7   :  { %163 = vmatpush3.bf16.msra.mxu0 %v176_v1  ;;  %s181_s0 = scalar_lea.vmem %s135_s27, 512  ;;  %p186_p1 = scmp.lt.s32.totalorder %s135_s27, %s135_s27 }
   0x8   :  { %164 = vmatprep.subr.bf16.mxu0 %v177_v2  ;;  %p182_p0 = scmp.ne.s32.totalorder %s135_s27, %s181_s0  ;;  %p187_p2 = scmp.lt.s32.totalorder %s181_s0, %s181_s0 }
   0xa   :  { %p188_p3 = por %p187_p2, %p186_p1 }
   0xb   :  { %165 = vmatpush3.bf16.msra.mxu0 %v177_v2 }
   0xc   :  { %166 = vmatprep.subr.bf16.mxu0 %v178_v4  ;;  %p189_p4 = pnand %p188_p3, %p182_p0 }
   0xf   :  { %167 = vmatpush3.bf16.msra.mxu0 %v178_v4 }
  0x12   :  { %169 = vmatmul.mubr.msk.bf16.vlgmr.msra.gmra.mxu0 %vm69_vm0, %v180_v5 }
  0xd2   :  { %v170_v7 = vpop.f32.mrf.mxu0 }
  0xd3   :  { %v119_v8 = vadd.f32 %v170_v7, %v145_v6 }
  0xd4   :  { %v110_v9 = vpop.f32.mrf.mxu0 }
  0xd5   :  { %127 = vst [vmem:[#allocation2 + $0x10] sm:$0xff] %v119_v8  ;;  %v111_v10 = vadd.f32 %v145_v6, %v110_v9 }
  0xd6   :  { %v171_v11 = vpop.f32.mrf.mxu0 }
  0xd7   :  { %125 = vst [vmem:[#allocation2] sm:$0xff] %v111_v10  ;;  %v122_v12 = vadd.f32 %v171_v11, %v145_v6 }
  0xd8   :  { %v113_v13 = vpop.f32.mrf.mxu0 }
  0xd9   :  { %128 = vst [vmem:[#allocation2 + $0x18] sm:$0xff] %v122_v12  ;;  %v114_v14 = vadd.f32 %v145_v6, %v113_v13 }
  0xdb   :  { %126 = vst [vmem:[#allocation2 + $0x8] sm:$0xff] %v114_v14 }
  0xdc   :  { %192 = shalt.err (!%p189_p4)
}
  0xdd   :  { %s204_s1 = smov 128   ;;  %s205_s2 = smov 8  }
  0xde   :  { %140 = dma.vmem_to_hbm [thread:$0]  %s135_s27, 512, %s253_s3, [#allocation3], %s204_s1, %s204_s1, %s205_s2  }
  0xdf   :  { %201 = dma.done.wait [#allocation3], 512  }
  0xe0   :  { %202 = vsyncadd [#allocation3], 4294966784 }
  0xe1   :  { %144 = vsyncpa [#allocation3], 1 }

</bundles_post_ra>
